<compile_context>
chip_gen: v6e
topology: v6e:2x2x1
jax: 0.10.0
libtpu: 0.0.40
codegen_flags: <defaults>
</compile_context>

<pallas_src>
import functools

import jax
import jax.numpy as jnp
from jax.experimental import pallas as pl
from jax.experimental.pallas import tpu as pltpu

EPS = 1e-5


def _query_vmem_limit():
    """Per-generation scoped-VMEM budget: ~half of physical, capped at 64 MiB."""
    cap = None
    try:
        info = pltpu.get_tpu_info()
        cap = getattr(info, "vmem_capacity_bytes", None)
    except Exception:
        cap = None
    if not cap:
        cap = 64 * 1024 * 1024          # conservative fallback (v7x physical VMEM)
    return int(min(cap // 2, 64 * 1024 * 1024))


_VMEM_LIMIT_BYTES = _query_vmem_limit()
# Per-block (input-side) byte target; in+out double-buffered plus fp32 temps stays
# well inside the scoped limit:  v7x -> ~3.2 MiB,  v5e/v6e -> 6 MiB.
_BLOCK_BYTES_TARGET = int(min(max(_VMEM_LIMIT_BYTES // 10, 2 * 1024 * 1024),
                              6 * 1024 * 1024))
_MAX_ROW_TILE = 8192


# ---------------------------------------------------------------------------
# Tile-size / layout helpers
# ---------------------------------------------------------------------------

def _sublane(dtype):
    # fp32 -> 8, bf16 -> 16, int8/fp8 -> 32
    return 8 * max(1, 4 // jnp.dtype(dtype).itemsize)


def _pick_row_tile(rows, feat, dtype):
    """Largest sublane-aligned row tile within the fp32 byte budget."""
    sub = _sublane(dtype)
    per_row = max(1, feat * 4)
    tr = _BLOCK_BYTES_TARGET // per_row
    tr = min(tr, _MAX_ROW_TILE, rows)
    if tr >= rows:
        return rows                      # full-dim block: always a legal shape
    tr = max(sub, (tr // sub) * sub)     # keep second-to-last dim sublane aligned
    return min(tr, rows)


def _pick_lane_tile(cols, rows):
    """Lane-axis (last dim) tile, 128-aligned, within the fp32 byte budget."""
    per_col = max(1, rows * 4)
    tc = _BLOCK_BYTES_TARGET // per_col
    if tc >= cols:
        return cols
    tc = max(128, (tc // 128) * 128)
    return min(tc, cols)


def _pick_batch_tile(batch, per_sample_elems):
    """How many whole (N, D) samples per block for resident instance norm."""
    per_sample_bytes = per_sample_elems * 4
    tb = max(1, _BLOCK_BYTES_TARGET // per_sample_bytes)
    return min(tb, batch)


def _maybe_fold(x2, d):
    """Fold k rows into the lane axis when D < 128 so loads/stores stay lane-dense.

    Only used for batch norm, where the per-feature math survives the fold with a
    trivial wrapper-side reshape (no in-kernel relayout needed)."""
    rows = x2.shape[0]
    if d >= 128 or (128 % d) != 0:
        return x2, 1
    k = 128 // d
    if rows % k != 0:
        return x2, 1
    return x2.reshape(rows // k, k * d), k


def _params(semantics):
    return pltpu.CompilerParams(dimension_semantics=semantics,
                                vmem_limit_bytes=_VMEM_LIMIT_BYTES)


# ---------------------------------------------------------------------------
# Batch norm kernels
# ---------------------------------------------------------------------------

def _bn_stats_kernel(x_ref, sum_ref, sumsq_ref, *, tile_rows, steps_per_core,
                     total_rows, need_mask):
    """Phase 1: streaming per-feature sum / sum-of-squares.

    Grid is (num_core_shards, steps_per_core): the leading axis is 'parallel' so
    v7x's two TensorCores each stream their own contiguous half of the rows into
    their own resident (1, D2) accumulator pair; the trailing axis is the
    'arbitrary' reduction axis."""
    c = pl.program_id(0)
    i = pl.program_id(1)

    @pl.when(i == 0)
    def _():
        sum_ref[...] = jnp.zeros_like(sum_ref)
        sumsq_ref[...] = jnp.zeros_like(sumsq_ref)

    x = x_ref[...].astype(jnp.float32)                       # (TR, D2)
    if need_mask:                                            # only when grid over-covers
        start = (c * steps_per_core + i) * tile_rows
        row = start + jax.lax.broadcasted_iota(jnp.int32, (x.shape[0], 1), 0)
        x = jnp.where(row < total_rows, x, 0.0)
    sum_ref[...] += jnp.sum(x, axis=0, keepdims=True)
    sumsq_ref[...] += jnp.sum(x * x, axis=0, keepdims=True)


def _bn_apply_kernel(x_ref, ss_ref, o_ref):
    """Phase 2: y = x * scale + shift; scale/shift packed into one (2, D2) input."""
    x = x_ref[...].astype(jnp.float32)
    o_ref[...] = (x * ss_ref[0:1, :] + ss_ref[1:2, :]).astype(o_ref.dtype)


# ---------------------------------------------------------------------------
# Instance norm kernels
# ---------------------------------------------------------------------------

def _instance_kernel(x_ref, w_ref, b_ref, o_ref):
    # x: (TB, N, D). InstanceNorm1d on x.permute(0,2,1): per-(b, d) stats over N.
    x = x_ref[...].astype(jnp.float32)
    mean = jnp.mean(x, axis=1, keepdims=True)
    diff = x - mean
    var = jnp.mean(diff * diff, axis=1, keepdims=True)
    inv_w = jax.lax.rsqrt(var + EPS) * w_ref[...]            # (TB, 1, D): cheap
    o_ref[...] = (diff * inv_w + b_ref[...]).astype(o_ref.dtype)


def _in_stats_kernel(x_ref, sum_ref, sumsq_ref, *, tile_n, total_n, need_mask):
    """Streaming per-(b, d) sum / sum-of-squares over the sequence axis."""
    i = pl.program_id(1)

    @pl.when(i == 0)
    def _():
        sum_ref[...] = jnp.zeros_like(sum_ref)
        sumsq_ref[...] = jnp.zeros_like(sumsq_ref)

    x = x_ref[...].astype(jnp.float32)                       # (1, TN, D)
    if need_mask:
        n = i * tile_n + jax.lax.broadcasted_iota(jnp.int32, (1, x.shape[1], 1), 1)
        x = jnp.where(n < total_n, x, 0.0)
    sum_ref[...] += jnp.sum(x, axis=1, keepdims=True)
    sumsq_ref[...] += jnp.sum(x * x, axis=1, keepdims=True)


def _in_apply_kernel(x_ref, ss_ref, o_ref):
    x = x_ref[...].astype(jnp.float32)                       # (1, TN, D)
    o_ref[...] = (x * ss_ref[:, 0:1, :] + ss_ref[:, 1:2, :]).astype(o_ref.dtype)


# ---------------------------------------------------------------------------
# Layer norm kernels (operate on x flattened to (B, N*D): lane-dense even for D<128)
# ---------------------------------------------------------------------------

def _layer_kernel(x_ref, o_ref, *, nd):
    # Per-sample mean / *unbiased* variance over the flattened (N*D) axis
    # (torch.var default), no affine — matches the original module's 'layer' branch.
    x = x_ref[...].astype(jnp.float32)                       # (TB, N*D)
    mean = jnp.mean(x, axis=-1, keepdims=True)
    diff = x - mean
    var = jnp.sum(diff * diff, axis=-1, keepdims=True) * (1.0 / (nd - 1))
    o_ref[...] = (diff * jax.lax.rsqrt(var + EPS)).astype(o_ref.dtype)


def _ln_stats_kernel(x_ref, sum_ref, sumsq_ref, *, tile_cols, total_cols, need_mask):
    """Streaming per-sample sum / sum-of-squares over the flattened (N*D) axis."""
    i = pl.program_id(0)

    @pl.when(i == 0)
    def _():
        sum_ref[...] = jnp.zeros_like(sum_ref)
        sumsq_ref[...] = jnp.zeros_like(sumsq_ref)

    x = x_ref[...].astype(jnp.float32)                       # (B, TC)
    if need_mask:
        col = i * tile_cols + jax.lax.broadcasted_iota(jnp.int32, (1, x.shape[1]), 1)
        x = jnp.where(col < total_cols, x, 0.0)
    sum_ref[...] += jnp.sum(x, axis=-1, keepdims=True)
    sumsq_ref[...] += jnp.sum(x * x, axis=-1, keepdims=True)


def _ln_apply_kernel(x_ref, ss_ref, o_ref):
    x = x_ref[...].astype(jnp.float32)                       # (B, TC)
    o_ref[...] = (x * ss_ref[:, 0:1] + ss_ref[:, 1:2]).astype(o_ref.dtype)


# ---------------------------------------------------------------------------
# RMS norm kernel
# ---------------------------------------------------------------------------

def _rms_kernel(x_ref, w_ref, o_ref):
    # x: (TR, D). RMSNorm over the last dim in fp32, cast back, then * weight
    # (same op order as the PyTorch reference).
    x = x_ref[...].astype(jnp.float32)
    ms = jnp.mean(x * x, axis=-1, keepdims=True)
    xhat = (x * jax.lax.rsqrt(ms + EPS)).astype(o_ref.dtype)
    o_ref[...] = (xhat * w_ref[...]).astype(o_ref.dtype)


# ---------------------------------------------------------------------------
# Wrappers
# ---------------------------------------------------------------------------

def _batchnorm(x, weight, bias):
    B, N, D = x.shape
    rows = B * N
    x2 = x.reshape(rows, D)
    x2, k = _maybe_fold(x2, D)                 # lane-dense when D < 128
    r2, d2 = x2.shape
    tr = _pick_row_tile(r2, d2, x.dtype)
    steps = pl.cdiv(r2, tr)
    # Dual-TensorCore split of the reduction (v7x): shard an even step count across a
    # leading 'parallel' axis; each shard owns its own resident accumulator pair.
    nc = 2 if (steps >= 2 and steps % 2 == 0) else 1
    steps_per_core = steps // nc
    need_mask = (steps * tr) > r2
    xbytes = x.size * x.dtype.itemsize

    # phase 1: streaming per-feature sum / sum-of-squares -----------------------
    sums, sumsqs = pl.pallas_call(
        functools.partial(_bn_stats_kernel, tile_rows=tr,
                          steps_per_core=steps_per_core,
                          total_rows=r2, need_mask=need_mask),
        out_shape=(jax.ShapeDtypeStruct((nc, d2), jnp.float32),
                   jax.ShapeDtypeStruct((nc, d2), jnp.float32)),
        grid=(nc, steps_per_core),
        in_specs=[pl.BlockSpec((tr, d2),
                               lambda c, i: (c * steps_per_core + i, 0))],
        out_specs=(pl.BlockSpec((1, d2), lambda c, i: (c, 0)),
                   pl.BlockSpec((1, d2), lambda c, i: (c, 0))),
        compiler_params=_params(("parallel", "arbitrary")),
        cost_estimate=pl.CostEstimate(flops=3 * r2 * d2, transcendentals=0,
                                      bytes_accessed=xbytes),
    )(x2)

    # tiny O(D) finalize in plain JAX (folds the nc shards and k lane copies) ----
    fsum = sums.reshape(nc * k, D).sum(axis=0)
    fsumsq = sumsqs.reshape(nc * k, D).sum(axis=0)
    mean = fsum / rows
    var = jnp.maximum(fsumsq / rows - mean * mean, 0.0)       # biased (training mode)
    scale = weight.astype(jnp.float32) * jax.lax.rsqrt(var + EPS)
    shift = bias.astype(jnp.float32) - mean * scale
    ss = jnp.concatenate([jnp.tile(scale.reshape(1, D), (1, k)),
                          jnp.tile(shift.reshape(1, D), (1, k))], axis=0)  # (2, d2)

    # phase 2: y = x * scale + shift --------------------------------------------
    out = pl.pallas_call(
        _bn_apply_kernel,
        out_shape=jax.ShapeDtypeStruct((r2, d2), x.dtype),
        grid=(steps,),
        in_specs=[pl.BlockSpec((tr, d2), lambda i: (i, 0)),
                  pl.BlockSpec((2, d2), lambda i: (0, 0))],   # params stay resident
        out_specs=pl.BlockSpec((tr, d2), lambda i: (i, 0)),
        compiler_params=_params(("parallel",)),
        cost_estimate=pl.CostEstimate(flops=2 * r2 * d2, transcendentals=0,
                                      bytes_accessed=2 * xbytes),
    )(x2, ss)
    return out.reshape(B, N, D)


def _instancenorm(x, weight, bias, force_streaming=False):
    B, N, D = x.shape
    itemsize = x.dtype.itemsize
    xbytes = x.size * itemsize

    # Single-pass path needs one whole (N, D) sample resident per block
    # (double-buffered in + out plus ~3 fp32 temps); otherwise stream.
    resident_need = N * D * (4 * itemsize + 12)
    if (not force_streaming) and resident_need <= _VMEM_LIMIT_BYTES:
        w = weight.reshape(1, 1, D)
        b = bias.reshape(1, 1, D)
        tb = _pick_batch_tile(B, N * D)
        return pl.pallas_call(
            _instance_kernel,
            out_shape=jax.ShapeDtypeStruct((B, N, D), x.dtype),
            grid=(pl.cdiv(B, tb),),
            in_specs=[pl.BlockSpec((tb, N, D), lambda i: (i, 0, 0)),
                      pl.BlockSpec((1, 1, D), lambda i: (0, 0, 0)),
                      pl.BlockSpec((1, 1, D), lambda i: (0, 0, 0))],
            out_specs=pl.BlockSpec((tb, N, D), lambda i: (i, 0, 0)),
            compiler_params=_params(("parallel",)),
            cost_estimate=pl.CostEstimate(flops=7 * x.size, transcendentals=B * D,
                                          bytes_accessed=2 * xbytes),
        )(x, w, b)

    # Streaming two-phase path: per-(b, d) sum/sumsq over tiled sequence blocks.
    tn = _pick_row_tile(N, D, x.dtype)
    nsteps = pl.cdiv(N, tn)
    need_mask = (nsteps * tn) > N
    sums, sumsqs = pl.pallas_call(
        functools.partial(_in_stats_kernel, tile_n=tn, total_n=N,
                          need_mask=need_mask),
        out_shape=(jax.ShapeDtypeStruct((B, 1, D), jnp.float32),
                   jax.ShapeDtypeStruct((B, 1, D), jnp.float32)),
        grid=(B, nsteps),
        in_specs=[pl.BlockSpec((1, tn, D), lambda b, i: (b, i, 0))],
        out_specs=(pl.BlockSpec((1, 1, D), lambda b, i: (b, 0, 0)),
                   pl.BlockSpec((1, 1, D), lambda b, i: (b, 0, 0))),
        compiler_params=_params(("parallel", "arbitrary")),
        cost_estimate=pl.CostEstimate(flops=3 * x.size, transcendentals=0,
                                      bytes_accessed=xbytes),
    )(x)

    mean = sums / N
    var = jnp.maximum(sumsqs / N - mean * mean, 0.0)          # biased (InstanceNorm1d)
    scale = weight.reshape(1, 1, D).astype(jnp.float32) * jax.lax.rsqrt(var + EPS)
    shift = bias.reshape(1, 1, D).astype(jnp.float32) - mean * scale
    ss = jnp.concatenate([scale, shift], axis=1)              # (B, 2, D), resident per b

    return pl.pallas_call(
        _in_apply_kernel,
        out_shape=jax.ShapeDtypeStruct((B, N, D), x.dtype),
        grid=(B, nsteps),
        in_specs=[pl.BlockSpec((1, tn, D), lambda b, i: (b, i, 0)),
                  pl.BlockSpec((1, 2, D), lambda b, i: (b, 0, 0))],
        out_specs=pl.BlockSpec((1, tn, D), lambda b, i: (b, i, 0)),
        compiler_params=_params(("parallel", "parallel")),
        cost_estimate=pl.CostEstimate(flops=2 * x.size, transcendentals=0,
                                      bytes_accessed=2 * xbytes),
    )(x, ss)


def _layernorm(x, force_streaming=False):
    B, N, D = x.shape
    nd = N * D
    itemsize = x.dtype.itemsize
    xbytes = x.size * itemsize
    # Contiguous (free) reshape: each sample becomes one lane-dense row of width N*D,
    # so stores stay unmasked even when D < 128.
    x2 = x.reshape(B, nd)

    sub = _sublane(x.dtype)
    min_rows = B if B <= sub else sub
    resident_need = min_rows * nd * (4 * itemsize + 12)
    if (not force_streaming) and resident_need <= _VMEM_LIMIT_BYTES:
        tb = _pick_row_tile(B, nd, x.dtype)
        out = pl.pallas_call(
            functools.partial(_layer_kernel, nd=nd),
            out_shape=jax.ShapeDtypeStruct((B, nd), x.dtype),
            grid=(pl.cdiv(B, tb),),
            in_specs=[pl.BlockSpec((tb, nd), lambda i: (i, 0))],
            out_specs=pl.BlockSpec((tb, nd), lambda i: (i, 0)),
            compiler_params=_params(("parallel",)),
            cost_estimate=pl.CostEstimate(flops=6 * x.size, transcendentals=B,
                                          bytes_accessed=2 * xbytes),
        )(x2)
        return out.reshape(B, N, D)

    # Streaming two-phase path: per-sample sum/sumsq over tiled lane blocks.
    tc = _pick_lane_tile(nd, B)
    nsteps = pl.cdiv(nd, tc)
    need_mask = (nsteps * tc) > nd
    sums, sumsqs = pl.pallas_call(
        functools.partial(_ln_stats_kernel, tile_cols=tc, total_cols=nd,
                          need_mask=need_mask),
        out_shape=(jax.ShapeDtypeStruct((B, 1), jnp.float32),
                   jax.ShapeDtypeStruct((B, 1), jnp.float32)),
        grid=(nsteps,),
        in_specs=[pl.BlockSpec((B, tc), lambda i: (0, i))],
        out_specs=(pl.BlockSpec((B, 1), lambda i: (0, 0)),
                   pl.BlockSpec((B, 1), lambda i: (0, 0))),
        compiler_params=_params(("arbitrary",)),
        cost_estimate=pl.CostEstimate(flops=3 * x.size, transcendentals=0,
                                      bytes_accessed=xbytes),
    )(x2)

    mean = sums / nd
    var = jnp.maximum((sumsqs - nd * mean * mean) / (nd - 1), 0.0)  # unbiased (torch.var)
    scale = jax.lax.rsqrt(var + EPS)
    shift = -mean * scale
    ss = jnp.concatenate([scale, shift], axis=1)              # (B, 2), resident

    out = pl.pallas_call(
        _ln_apply_kernel,
        out_shape=jax.ShapeDtypeStruct((B, nd), x.dtype),
        grid=(nsteps,),
        in_specs=[pl.BlockSpec((B, tc), lambda i: (0, i)),
                  pl.BlockSpec((B, 2), lambda i: (0, 0))],
        out_specs=pl.BlockSpec((B, tc), lambda i: (0, i)),
        compiler_params=_params(("parallel",)),
        cost_estimate=pl.CostEstimate(flops=2 * x.size, transcendentals=B,
                                      bytes_accessed=2 * xbytes),
    )(x2, ss)
    return out.reshape(B, N, D)


def _rmsnorm(x, weight):
    # Note: when D < 128 the output is not lane-dense; folding rows into the lane axis
    # would require an in-kernel relayout for the per-row reduce, so we accept the hit
    # (real transformer embed dims are >= 128 and are automatically lane-dense).
    B, N, D = x.shape
    rows = B * N
    x2 = x.reshape(rows, D)
    w = weight.reshape(1, D)
    tr = _pick_row_tile(rows, D, x.dtype)
    grid = (pl.cdiv(rows, tr),)
    xbytes = x.size * x.dtype.itemsize
    out = pl.pallas_call(
        _rms_kernel,
        out_shape=jax.ShapeDtypeStruct((rows, D), x.dtype),
        grid=grid,
        in_specs=[pl.BlockSpec((tr, D), lambda i: (i, 0)),
                  pl.BlockSpec((1, D), lambda i: (0, 0))],
        out_specs=pl.BlockSpec((tr, D), lambda i: (i, 0)),
        compiler_params=_params(("parallel",)),
        cost_estimate=pl.CostEstimate(flops=4 * x.size, transcendentals=rows,
                                      bytes_accessed=2 * xbytes),
    )(x2, w)
    return out.reshape(B, N, D)


def normalization_forward(x, normalization, params):
    """Mirror of Normalization.forward for x of shape (B, N, D)."""
    if normalization == "batch":
        # TODO(synk): training-mode batch statistics only (no running-mean/var state).
        return _batchnorm(x, params["weight"], params["bias"])
    elif normalization == "instance":
        return _instancenorm(x, params["weight"], params["bias"])
    elif normalization == "layer":
        return _layernorm(x)
    elif normalization == "rms":
        return _rmsnorm(x, params["weight"])
    else:
        # Unknown normalizer -> identity (module logs an error and skips).
        return x


# ---------------------------------------------------------------------------
# Pure-JAX references (correctness sanity check)
# ---------------------------------------------------------------------------

def _ref(x, normalization, params):
    B, N, D = x.shape
    if normalization == "batch":
        x2 = x.reshape(B * N, D).astype(jnp.float32)
        m = x2.mean(0, keepdims=True)
        v = ((x2 - m) ** 2).mean(0, keepdims=True)
        y = (x2 - m) / jnp.sqrt(v + EPS) * params["weight"] + params["bias"]
        return y.reshape(B, N, D).astype(x.dtype)
    if normalization == "instance":
        xf = x.astype(jnp.float32)
        m = xf.mean(1, keepdims=True)
        v = ((xf - m) ** 2).mean(1, keepdims=True)
        y = (xf - m) / jnp.sqrt(v + EPS) * params["weight"] + params["bias"]
        return y.astype(x.dtype)
    if normalization == "layer":
        xf = x.astype(jnp.float32)
        m = xf.mean((1, 2), keepdims=True)
        v = jnp.sum((xf - m) ** 2, (1, 2), keepdims=True) / (N * D - 1)
        return ((xf - m) / jnp.sqrt(v + EPS)).astype(x.dtype)
    if normalization == "rms":
        xf = x.astype(jnp.float32)
        y = (xf * jax.lax.rsqrt((xf * xf).mean(-1, keepdims=True) + EPS)).astype(x.dtype)
        return y * params["weight"]
    return x


# ---------------------------------------------------------------------------
# Main
# ---------------------------------------------------------------------------

if __name__ == "__main__":
    key = jax.random.PRNGKey(0)

    def params_for(D):
        return {
            "batch":    {"weight": jnp.full((D,), 1.5, jnp.float32),
                         "bias": jnp.full((D,), 0.25, jnp.float32)},
            "instance": {"weight": jnp.full((D,), 0.75, jnp.float32),
                         "bias": jnp.full((D,), -0.5, jnp.float32)},
            "layer":    {},
            "rms":      {"weight": jnp.linspace(0.5, 1.5, D).astype(jnp.float32)},
        }

    def run_case(B, N, D, tol, norms=("batch", "instance", "layer", "rms")):
        kx = jax.random.fold_in(key, B * 1000003 + N * 101 + D)
        x = jax.random.normal(kx, (B, N, D), dtype=jnp.float32)
        p = params_for(D)
        for nt in norms:
            out = jax.block_until_ready(normalization_forward(x, nt, p[nt]))
            ref = _ref(x, nt, p[nt])
            assert out.shape == x.shape and out.dtype == x.dtype
            err = float(jnp.max(jnp.abs(out - ref)))
            assert err < tol, f"{nt} ({B},{N},{D}): max abs err {err}"

    # Small demo shape consistent with the module (batch=2, seq=8, embed_dim=32).
    run_case(2, 8, 32, 1e-4)
    # Multi-row tiled grids / resident single-pass instance & layer paths.
    run_case(4, 2048, 32, 1e-4)
    # Exercise the dual-core BN stats split and the edge-row mask (partial tail tile).
    run_case(6, 8192, 32, 2e-4, norms=("batch",))

    # Exercise the streaming (two-phase) instance / layer paths with partial tiles.
    B, N, D = 2, 20480, 64
    xs = jax.random.normal(jax.random.fold_in(key, 7), (B, N, D), dtype=jnp.float32)
    p = params_for(D)
    out_i = jax.block_until_ready(
        _instancenorm(xs, p["instance"]["weight"], p["instance"]["bias"],
                      force_streaming=True))
    err_i = float(jnp.max(jnp.abs(out_i - _ref(xs, "instance", p["instance"]))))
    assert err_i < 2e-4, f"streaming instance: max abs err {err_i}"
    out_l = jax.block_until_ready(_layernorm(xs, force_streaming=True))
    err_l = float(jnp.max(jnp.abs(out_l - _ref(xs, "layer", {}))))
    assert err_l < 2e-4, f"streaming layer: max abs err {err_l}"

    print("KERNEL_OK")
</pallas_src>

<mosaic_0001>
module attributes {stable_mosaic.version = 11 : i64} {
  func.func @_bn_stats_kernel(%arg0: i32, %arg1: i32, %arg2: memref<4x128xf32, #tpu.memory_space<vmem>>, %arg3: memref<1x128xf32, #tpu.memory_space<vmem>>, %arg4: memref<1x128xf32, #tpu.memory_space<vmem>>) attributes {dimension_semantics = [#tpu.dimension_semantics<parallel>, #tpu.dimension_semantics<arbitrary>], iteration_bounds = array<i64: 1, 1>, scalar_prefetch = 0 : i64, scratch_operands = 0 : i64, tpu.core_type = #tpu.core_type<tc>, window_params = [{transform_indices = @transform_0, window_bounds = array<i64: 4, 128>}, {transform_indices = @transform_1, window_bounds = array<i64: 1, 128>}, {transform_indices = @transform_2, window_bounds = array<i64: 1, 128>}]} {
    %c0_i32 = arith.constant 0 : i32
    %0 = arith.cmpi eq, %arg1, %c0_i32 : i32
    %1 = arith.extui %0 : i1 to i32
    %c0_i32_0 = arith.constant 0 : i32
    %2 = arith.cmpi ne, %1, %c0_i32_0 : i32
    scf.if %2 {
      %cst_11 = arith.constant 0.000000e+00 : f32
      %15 = vector.broadcast %cst_11 : f32 to vector<1x128xf32>
      %c0_12 = arith.constant 0 : index
      %c0_13 = arith.constant 0 : index
      %16 = vector.load %arg3[%c0_12, %c0_13] : memref<1x128xf32, #tpu.memory_space<vmem>>, vector<1x128xf32>
      tpu.vector_store %arg3[%c0_12, %c0_13], %15 {strides = array<i32>} : memref<1x128xf32, #tpu.memory_space<vmem>>, vector<1x128xf32>,
      %cst_14 = arith.constant 0.000000e+00 : f32
      %17 = vector.broadcast %cst_14 : f32 to vector<1x128xf32>
      %c0_15 = arith.constant 0 : index
      %c0_16 = arith.constant 0 : index
      %18 = vector.load %arg4[%c0_15, %c0_16] : memref<1x128xf32, #tpu.memory_space<vmem>>, vector<1x128xf32>
      tpu.vector_store %arg4[%c0_15, %c0_16], %17 {strides = array<i32>} : memref<1x128xf32, #tpu.memory_space<vmem>>, vector<1x128xf32>,
    } else {
    }
    %c0 = arith.constant 0 : index
    %c0_1 = arith.constant 0 : index
    %3 = vector.load %arg2[%c0, %c0_1] : memref<4x128xf32, #tpu.memory_space<vmem>>, vector<4x128xf32>
    %c0_2 = arith.constant 0 : index
    %c0_3 = arith.constant 0 : index
    %4 = vector.load %arg3[%c0_2, %c0_3] : memref<1x128xf32, #tpu.memory_space<vmem>>, vector<1x128xf32>
    %cst = arith.constant dense<0.000000e+00> : vector<128xf32>
    %5 = vector.multi_reduction <add>, %3, %cst [0] : vector<4x128xf32> to vector<128xf32>
    %6 = vector.shape_cast %5 : vector<128xf32> to vector<1x128xf32>
    %7 = arith.addf %4, %6 : vector<1x128xf32>
    %c0_4 = arith.constant 0 : index
    %c0_5 = arith.constant 0 : index
    %8 = vector.load %arg3[%c0_4, %c0_5] : memref<1x128xf32, #tpu.memory_space<vmem>>, vector<1x128xf32>
    tpu.vector_store %arg3[%c0_4, %c0_5], %7 {strides = array<i32>} : memref<1x128xf32, #tpu.memory_space<vmem>>, vector<1x128xf32>,
    %c0_6 = arith.constant 0 : index
    %c0_7 = arith.constant 0 : index
    %9 = vector.load %arg4[%c0_6, %c0_7] : memref<1x128xf32, #tpu.memory_space<vmem>>, vector<1x128xf32>
    %10 = arith.mulf %3, %3 : vector<4x128xf32>
    %cst_8 = arith.constant dense<0.000000e+00> : vector<128xf32>
    %11 = vector.multi_reduction <add>, %10, %cst_8 [0] : vector<4x128xf32> to vector<128xf32>
    %12 = vector.shape_cast %11 : vector<128xf32> to vector<1x128xf32>
    %13 = arith.addf %9, %12 : vector<1x128xf32>
    %c0_9 = arith.constant 0 : index
    %c0_10 = arith.constant 0 : index
    %14 = vector.load %arg4[%c0_9, %c0_10] : memref<1x128xf32, #tpu.memory_space<vmem>>, vector<1x128xf32>
    tpu.vector_store %arg4[%c0_9, %c0_10], %13 {strides = array<i32>} : memref<1x128xf32, #tpu.memory_space<vmem>>, vector<1x128xf32>,
    return
  }
  func.func @transform_0(%arg0: i32, %arg1: i32) -> (i32, i32) {
    %c1_i32 = arith.constant 1 : i32
    %0 = arith.muli %arg0, %c1_i32 : i32
    %1 = arith.addi %0, %arg1 : i32
    %c0_i32 = arith.constant 0 : i32
    %c0_i32_0 = arith.constant 0 : i32
    return %1, %c0_i32 : i32, i32
  }
  func.func @transform_1(%arg0: i32, %arg1: i32) -> (i32, i32) {
    %c0_i32 = arith.constant 0 : i32
    %c0_i32_0 = arith.constant 0 : i32
    return %arg0, %c0_i32 : i32, i32
  }
  func.func @transform_2(%arg0: i32, %arg1: i32) -> (i32, i32) {
    %c0_i32 = arith.constant 0 : i32
    %c0_i32_0 = arith.constant 0 : i32
    return %arg0, %c0_i32 : i32, i32
  }
}

</mosaic_0001>

<bundles_post_ra>
// kernel: tpu_custom_call.1
= control target key start
LH: loop header
LB: loop body
LE: loop exit
PB: predicated region body
PF: predicated region fallthrough
CT: control target
= control target key end

     0   :  { %8 = vsyncpa [#allocation3], 0  ;;  %s184_s0 = inlined_call_operand.hbm [shape: f32[4,128], index: 0, kind: input, shape index: {}]   ;;  %s185_s1 = inlined_call_operand.hbm [shape: f32[1,128], index: 1, kind: output, shape index: {0}]   ;;  %s186_s2 = inlined_call_operand.hbm [shape: f32[1,128], index: 2, kind: output, shape index: {1}]  }
   0x1   :  { %9 = vsyncpa [#allocation4], 0 }
   0x2   :  { %10 = vsyncpa [#allocation7], 0  ;;  %s156_s9 = smov [#allocation2]  }
   0x3   :  { %s20_s10 = sshll.u32 %s156_s9, 4  ;;  %s21_s10 = int_to_ptr.vmem [resolvable:$true] %s20_s10 }
   0x4   :  { %s98_s11 = scalar_lea.vmem %s21_s10, 64  ;;  %p103_p1 = scmp.lt.s32.totalorder %s21_s10, %s21_s10 }
   0x5   :  { %p99_p0 = scmp.ne.s32.totalorder %s21_s10, %s98_s11  ;;  %p104_p2 = scmp.lt.s32.totalorder %s98_s11, %s98_s11 }
   0x7   :  { %p105_p3 = por %p104_p2, %p103_p1 }
   0x9   :  { %p106_p4 = pnand %p105_p3, %p99_p0 }
   0xb   :  { %109 = shalt.err (!%p106_p4)
}
   0xc   :  { %23 = dma.hbm_to_vmem [thread:$0]  %s184_s0, 64, %s21_s10, [#allocation3]  }
   0xd   :  { %150 = dma.done.wait [#allocation3], 64  }
   0xe   :  { %151 = vsyncadd [#allocation3], 4294967232  ;;  %v157_v0 = vmov 0.0   ;;  %vm36_vm0 = vcmask 1043456   ;;  %v34_v1 = vld [vmem:[#allocation2] sm:$0xf] }
   0xf   :  { %32 = vst [vmem:[#allocation5] sm:$0x1] %v157_v0  ;;  %33 = vst [vmem:[#allocation6] sm:$0x1] %v157_v0  ;;  %v37_v2 = vsel %vm36_vm0, %v34_v1, 0.0  ;;  %v47_v3 = vmul.f32 %v34_v1, %v34_v1  ;;  %s158_s0 = smov [#allocation5]  }
  0x10   :  { %v38_v4 = vrot.slane %v37_v2, 4  ;;  %s63_s14 = sshll.u32 %s158_s0, 4  ;;  %s159_s15 = smov [#allocation6]   ;;  %s64_s14 = int_to_ptr.vmem [resolvable:$true] %s63_s14 }
  0x11   :  { %v48_v5 = vsel %vm36_vm0, %v47_v3, 0.0  ;;  %s73_s16 = sshll.u32 %s159_s15, 4  ;;  %s110_s17 = scalar_lea.vmem %s64_s14, 16  ;;  %s74_s16 = int_to_ptr.vmem [resolvable:$true] %s73_s16 }
  0x12   :  { %v39_v6 = vadd.f32 %v38_v4, %v37_v2  ;;  %v49_v7 = vrot.slane %v48_v5, 4  ;;  %p111_p5 = scmp.ne.s32.totalorder %s64_s14, %s110_s17  ;;  %s114_s18 = scalar_lea.vmem %s64_s14, 32 }
  0x13   :  { %p115_p6 = scmp.lt.s32.totalorder %s64_s14, %s64_s14  ;;  %p116_p7 = scmp.lt.s32.totalorder %s114_s18, %s110_s17 }
  0x14   :  { %v40_v8 = vrot.slane %v39_v6, 2  ;;  %v50_v9 = vadd.f32 %v49_v7, %v48_v5 }
  0x15   :  { %p117_p8 = por %p116_p7, %p115_p6 }
  0x16   :  { %v41_v10 = vadd.f32 %v40_v8, %v39_v6  ;;  %v51_v11 = vrot.slane %v50_v9, 2  ;;  %v35_v14 = vld [vmem:[#allocation5] sm:$0x1]  ;;  %v46_v17 = vld [vmem:[#allocation6] sm:$0x1] }
  0x17   :  { %p118_p9 = pnand %p117_p8, %p111_p5 }
  0x18   :  { %v42_v12 = vrot.slane %v41_v10, 1  ;;  %v52_v13 = vadd.f32 %v51_v11, %v50_v9 }
  0x1a   :  { %v43_v15 = vadd.f32 %v42_v12, %v41_v10  ;;  %v53_v16 = vrot.slane %v52_v13, 1 }
  0x1c   :  { %v44_v18 = vadd.f32 %v43_v15, %v35_v14  ;;  %v54_v19 = vadd.f32 %v53_v16, %v52_v13 }
  0x1e   :  { %45 = vst [vmem:[#allocation5] sm:$0x1] %v44_v18  ;;  %v55_v20 = vadd.f32 %v54_v19, %v46_v17 }
  0x1f   :  { %121 = shalt.err (!%p118_p9)
}
  0x20   :  { %66 = dma.vmem_to_hbm [thread:$0]  %s64_s14, 16, %s185_s1, [#allocation4]   ;;  %56 = vst [vmem:[#allocation6] sm:$0x1] %v55_v20 }
  0x21   :  { %s130_s21 = scalar_lea.vmem %s74_s16, 16  ;;  %s134_s22 = scalar_lea.vmem %s74_s16, 32 }
  0x22   :  { %p131_p10 = scmp.ne.s32.totalorder %s74_s16, %s130_s21  ;;  %p135_p11 = scmp.lt.s32.totalorder %s74_s16, %s74_s16 }
  0x23   :  { %p136_p12 = scmp.lt.s32.totalorder %s134_s22, %s130_s21 }
  0x25   :  { %p137_p13 = por %p136_p12, %p135_p11 }
  0x27   :  { %p138_p0 = pnand %p137_p13, %p131_p10 }
  0x29   :  { %141 = shalt.err (!%p138_p0)
}
  0x2a   :  { %76 = dma.vmem_to_hbm [thread:$0]  %s74_s16, 16, %s186_s2, [#allocation7]  }
  0x2b   :  { %152 = dma.done.wait [#allocation4], 16  }
  0x2c   :  { %153 = vsyncadd [#allocation4], 4294967280 }
  0x2d   :  { %154 = dma.done.wait [#allocation7], 16  }
  0x2e   :  { %155 = vsyncadd [#allocation7], 4294967280 }
  0x2f   :  { %83 = vsyncpa [#allocation3], 1 }
  0x30   :  { %84 = vsyncpa [#allocation4], 1 }
  0x31   :  { %85 = vsyncpa [#allocation7], 1 }

</bundles_post_ra>
